<compile_context>
chip_gen: v7x
topology: tpu7x:2x2x1
jax: 0.10.0
libtpu: 0.0.40
codegen_flags: <defaults>
</compile_context>

<pallas_src>
import jax
import jax.numpy as jnp
from jax.experimental import pallas as pl
from jax.experimental.pallas import tpu as pltpu


def _attention_kernel(q_ref, k_ref, v_ref,
                      wq_ref, bq_ref, wk_ref, bk_ref, wv_ref, bv_ref,
                      wo_ref, bo_ref,
                      out_ref, attn_ref,
                      acc_ref):
    """One (batch_block, head) tile per grid step.

    Kernel-visible shapes (bb = batch_block, N = bb*S, d = head_dim):
      q/k/v_ref : (N, H)        flattened activations for this batch block
      wq/wk/wv  : (1, H, d)     per-head projection columns (scale folded into wq)
      bq/bk/bv  : (1, 1, d)
      wo_ref    : (1, d, H)     per-head output-projection rows
      bo_ref    : (1, H)        grid-invariant output bias
      out_ref   : (N, H)        resident across the head axis (accumulator output)
      attn_ref  : (bb, 1, S, S) per-head attention weights
      acc_ref   : (N, H) f32    VMEM scratch for the output-projection accumulation
    """
    h = pl.program_id(1)
    bb, _, S, _ = attn_ref.shape
    d = wq_ref.shape[2]

    x_q = q_ref[...]
    x_k = k_ref[...]
    x_v = v_ref[...]

    # Per-head projections straight from the pre-split weight slices:
    # (N, H) @ (H, d) -> (N, d).  No head-split reshape/transpose (XLU relayout).
    qh = jnp.dot(x_q, wq_ref[0], preferred_element_type=jnp.float32) + bq_ref[0]
    kh = jnp.dot(x_k, wk_ref[0], preferred_element_type=jnp.float32) + bk_ref[0]
    vh = jnp.dot(x_v, wv_ref[0], preferred_element_type=jnp.float32) + bv_ref[0]

    # Scores, batched over the batch-block dim; contraction on the LAST dim of
    # both operands (no transposed K copy).  bf16 MXU operands, f32 accumulation.
    qb = qh.astype(jnp.bfloat16).reshape(bb, S, d)
    kb = kh.astype(jnp.bfloat16).reshape(bb, S, d)
    s = jnp.einsum('bqd,bkd->bqk', qb, kb,
                   preferred_element_type=jnp.float32)          # (bb, S, S)

    # Numerically-stable softmax with EXACT division so the user-visible
    # attention rows sum to 1 (denominator is only bb*S values).
    s = jnp.exp(s - jnp.max(s, axis=-1, keepdims=True))
    p = s / jnp.sum(s, axis=-1, keepdims=True)
    attn_ref[...] = p[:, None].astype(attn_ref.dtype)           # (bb, 1, S, S)

    # Per-head context: (bb,S,S) @ (bb,S,d), bf16 operands / f32 accumulation.
    ctx = jnp.einsum('bqk,bkd->bqd', p.astype(jnp.bfloat16),
                     vh.astype(jnp.bfloat16).reshape(bb, S, d),
                     preferred_element_type=jnp.float32)        # (bb, S, d)

    # Output projection accumulated over the head grid axis (pl.when init/finalize).
    @pl.when(h == 0)
    def _():
        acc_ref[...] = jnp.zeros_like(acc_ref)

    acc_ref[...] += jnp.dot(ctx.reshape(bb * S, d), wo_ref[0],
                            preferred_element_type=jnp.float32)

    @pl.when(h == pl.num_programs(1) - 1)
    def _():
        out_ref[...] = (acc_ref[...] + bo_ref[...]).astype(out_ref.dtype)


def prepare_params(params, num_heads):
    """One-time host-side prep (param layout only, no per-call work):
      * nn.Linear stores W as (out, in); transpose to (in, out),
      * split q/k/v projection columns and output-projection rows per head so
        each grid step only DMAs the per-head slice it needs and the kernel
        never does a head-split relayout (full HxH weights never live in VMEM),
      * fold the 1/sqrt(head_dim) softmax scale into wq / bq."""
    wq = jnp.asarray(params["wq"], jnp.float32)
    wk = jnp.asarray(params["wk"], jnp.float32)
    wv = jnp.asarray(params["wv"], jnp.float32)
    wo = jnp.asarray(params["wo"], jnp.float32)
    bq = jnp.asarray(params["bq"], jnp.float32)
    bk = jnp.asarray(params["bk"], jnp.float32)
    bv = jnp.asarray(params["bv"], jnp.float32)
    bo = jnp.asarray(params["bo"], jnp.float32)

    H = wq.shape[0]
    assert H % num_heads == 0
    d = H // num_heads
    scale = float(d) ** -0.5

    def split_out_cols(w):   # (out,in) -> (nh, H_in, d): per-head columns of w.T
        return jnp.transpose(w.T.reshape(H, num_heads, d), (1, 0, 2))

    return {
        "wq": split_out_cols(wq) * scale,
        "wk": split_out_cols(wk),
        "wv": split_out_cols(wv),
        "wo": wo.T.reshape(num_heads, d, H),            # per-head rows of Wo^T
        "bq": (bq * scale).reshape(num_heads, 1, d),
        "bk": bk.reshape(num_heads, 1, d),
        "bv": bv.reshape(num_heads, 1, d),
        "bo": bo.reshape(1, H),
    }


def _pick_batch_block(B, S, H, num_heads, budget_bytes=8 << 20):
    """Pack several batch elements into one grid step (amortizes ~0.35us/step
    overhead, fills sublanes at small shapes) while keeping the per-step
    footprint well under the per-generation VMEM budget
    (v7x: 64 MiB physical; v5e/v6e: 128 MiB, scoped defaults 16/32 MiB)."""
    d = max(1, H // num_heads)
    per_b = 4 * (2 * 3 * S * H        # q,k,v blocks (double-buffered)
                 + 2 * S * H          # out block + acc scratch
                 + 2 * 2 * S * S      # attn block (double-buffered) + softmax temps
                 + 3 * S * d)         # per-head Q/K/V
    bb = max(1, min(B, budget_bytes // max(per_b, 1)))
    while B % bb:
        bb -= 1
    return bb


def attention_module_forward(query, key, value, prepped, num_heads, batch_block=None):
    """Pallas implementation of AttentionModule.forward (mask=None, eval mode)."""
    B, S, H = query.shape
    assert key.shape == (B, S, H) and value.shape == (B, S, H)
    assert H % num_heads == 0
    head_dim = H // num_heads

    if batch_block is None:
        batch_block = _pick_batch_block(B, S, H, num_heads)
    # (8,128) rule: flattened activation blocks need a sublane-aligned row count
    # unless the block spans the whole array.
    if (batch_block * S) % 8 != 0:
        batch_block = B
    assert B % batch_block == 0
    nb = B // batch_block
    N = batch_block * S

    # Flatten (B,S,H) -> (B*S,H) host-side (free, layout-preserving) so the
    # projection matmuls need no in-kernel reshape of the activations.
    q2 = query.reshape(B * S, H)
    k2 = key.reshape(B * S, H)
    v2 = value.reshape(B * S, H)

    act_spec  = pl.BlockSpec((N, H), lambda bi, h: (bi, 0))
    w_spec    = pl.BlockSpec((1, H, head_dim), lambda bi, h: (h, 0, 0))
    b_spec    = pl.BlockSpec((1, 1, head_dim), lambda bi, h: (h, 0, 0))
    wo_spec   = pl.BlockSpec((1, head_dim, H), lambda bi, h: (h, 0, 0))
    # Grid-invariant (constant index_map) output bias; only H*4 bytes so the
    # default double-buffer is irrelevant (full weights never sit in VMEM).
    bo_spec   = pl.BlockSpec((1, H), lambda bi, h: (0, 0))
    out_spec  = pl.BlockSpec((N, H), lambda bi, h: (bi, 0))     # resident across head axis
    attn_spec = pl.BlockSpec((batch_block, 1, S, S), lambda bi, h: (bi, h, 0, 0))

    out2, attn = pl.pallas_call(
        _attention_kernel,
        out_shape=(
            jax.ShapeDtypeStruct((B * S, H), jnp.float32),
            jax.ShapeDtypeStruct((B, num_heads, S, S), jnp.float32),
        ),
        grid_spec=pltpu.PrefetchScalarGridSpec(
            num_scalar_prefetch=0,
            grid=(nb, num_heads),                 # head (accumulation) axis innermost
            in_specs=[
                act_spec, act_spec, act_spec,     # q, k, v
                w_spec, b_spec,                   # Wq (scaled), bq (scaled)
                w_spec, b_spec,                   # Wk, bk
                w_spec, b_spec,                   # Wv, bv
                wo_spec, bo_spec,                 # Wo, bo
            ],
            out_specs=[out_spec, attn_spec],
            scratch_shapes=[pltpu.VMEM((N, H), jnp.float32)],   # output-proj accumulator
        ),
        compiler_params=pltpu.CompilerParams(
            # Batch axis shards across v7x's two TensorCores; the head axis
            # accumulates the output projection so it must stay "arbitrary".
            dimension_semantics=("parallel", "arbitrary"),
            # Explicit scoped-VMEM budget, valid on v5e/v6e (128 MiB physical)
            # and v7x (64 MiB physical).
            vmem_limit_bytes=32 * 1024 * 1024,
        ),
    )(q2, k2, v2,
      prepped["wq"], prepped["bq"], prepped["wk"], prepped["bk"],
      prepped["wv"], prepped["bv"], prepped["wo"], prepped["bo"])

    return out2.reshape(B, S, H), attn


def _reference_forward(query, key, value, params, num_heads):
    """Pure-JAX reference mirroring the PyTorch forward (mask=None, eval)."""
    B, S, H = query.shape
    d = H // num_heads
    scale = float(d) ** -0.5

    def lin(x, w, b):
        return x @ w.T + b

    Q = lin(query, params["wq"], params["bq"]).reshape(B, S, num_heads, d).transpose(0, 2, 1, 3)
    K = lin(key, params["wk"], params["bk"]).reshape(B, S, num_heads, d).transpose(0, 2, 1, 3)
    V = lin(value, params["wv"], params["bv"]).reshape(B, S, num_heads, d).transpose(0, 2, 1, 3)
    scores = jnp.einsum("bhqd,bhkd->bhqk", Q, K) * scale
    attn = jax.nn.softmax(scores, axis=-1)
    ctx = jnp.einsum("bhqk,bhkd->bhqd", attn, V)
    ctx = ctx.transpose(0, 2, 1, 3).reshape(B, S, H)
    out = lin(ctx, params["wo"], params["bo"])
    return out, attn


if __name__ == "__main__":
    B, S, H, num_heads = 2, 8, 32, 4

    key = jax.random.PRNGKey(0)
    keys = jax.random.split(key, 12)

    # Deterministic parameter init (uniform, roughly nn.Linear default range).
    bound = 1.0 / (H ** 0.5)
    params = {
        "wq": jax.random.uniform(keys[0], (H, H), jnp.float32, -bound, bound),
        "bq": jax.random.uniform(keys[1], (H,), jnp.float32, -bound, bound),
        "wk": jax.random.uniform(keys[2], (H, H), jnp.float32, -bound, bound),
        "bk": jax.random.uniform(keys[3], (H,), jnp.float32, -bound, bound),
        "wv": jax.random.uniform(keys[4], (H, H), jnp.float32, -bound, bound),
        "bv": jax.random.uniform(keys[5], (H,), jnp.float32, -bound, bound),
        "wo": jax.random.uniform(keys[6], (H, H), jnp.float32, -bound, bound),
        "bo": jax.random.uniform(keys[7], (H,), jnp.float32, -bound, bound),
    }

    query = jax.random.normal(keys[8], (B, S, H), jnp.float32)
    key_in = jax.random.normal(keys[9], (B, S, H), jnp.float32)
    value = jax.random.normal(keys[10], (B, S, H), jnp.float32)

    prepped = prepare_params(params, num_heads)   # one-time weight re-layout / scale fold

    out, attn = attention_module_forward(query, key_in, value, prepped, num_heads)
    out = jax.block_until_ready(out)
    attn = jax.block_until_ready(attn)

    ref_out, ref_attn = _reference_forward(query, key_in, value, params, num_heads)
    assert out.shape == (B, S, H)
    assert attn.shape == (B, num_heads, S, S)
    # bf16 MXU operands in the score / attention*V matmuls (f32 accumulation)
    # introduce ~1e-3-level error vs. the all-f32 reference; the softmax itself
    # uses exact division, so attention rows sum to 1.
    assert jnp.allclose(out, ref_out, atol=2e-3, rtol=2e-3)
    assert jnp.allclose(attn, ref_attn, atol=2e-3, rtol=2e-3)
    assert jnp.allclose(jnp.sum(attn, axis=-1), 1.0, atol=1e-5, rtol=1e-5)

    print("KERNEL_OK")
</pallas_src>

<mosaic_0001>
module attributes {stable_mosaic.version = 11 : i64} {
  func.func @_attention_kernel(%arg0: i32, %arg1: i32, %arg2: memref<16x32xf32, #tpu.memory_space<vmem>>, %arg3: memref<16x32xf32, #tpu.memory_space<vmem>>, %arg4: memref<16x32xf32, #tpu.memory_space<vmem>>, %arg5: memref<1x32x8xf32, #tpu.memory_space<vmem>>, %arg6: memref<1x1x8xf32, #tpu.memory_space<vmem>>, %arg7: memref<1x32x8xf32, #tpu.memory_space<vmem>>, %arg8: memref<1x1x8xf32, #tpu.memory_space<vmem>>, %arg9: memref<1x32x8xf32, #tpu.memory_space<vmem>>, %arg10: memref<1x1x8xf32, #tpu.memory_space<vmem>>, %arg11: memref<1x8x32xf32, #tpu.memory_space<vmem>>, %arg12: memref<1x32xf32, #tpu.memory_space<vmem>>, %arg13: memref<16x32xf32, #tpu.memory_space<vmem>>, %arg14: memref<2x1x8x8xf32, #tpu.memory_space<vmem>>, %arg15: memref<16x32xf32, #tpu.memory_space<vmem>>) attributes {dimension_semantics = [#tpu.dimension_semantics<parallel>, #tpu.dimension_semantics<arbitrary>], iteration_bounds = array<i64: 1, 4>, scalar_prefetch = 0 : i64, scratch_operands = 1 : i64, tpu.core_type = #tpu.core_type<tc>, window_params = [{transform_indices = @transform_0, window_bounds = array<i64: 16, 32>}, {transform_indices = @transform_1, window_bounds = array<i64: 16, 32>}, {transform_indices = @transform_2, window_bounds = array<i64: 16, 32>}, {transform_indices = @transform_3, window_bounds = array<i64: 1, 32, 8>}, {transform_indices = @transform_4, window_bounds = array<i64: 1, 1, 8>}, {transform_indices = @transform_5, window_bounds = array<i64: 1, 32, 8>}, {transform_indices = @transform_6, window_bounds = array<i64: 1, 1, 8>}, {transform_indices = @transform_7, window_bounds = array<i64: 1, 32, 8>}, {transform_indices = @transform_8, window_bounds = array<i64: 1, 1, 8>}, {transform_indices = @transform_9, window_bounds = array<i64: 1, 8, 32>}, {pipeline_mode = #tpu.pipeline_mode<synchronous>, transform_indices = @transform_10, window_bounds = array<i64: 1, 32>}, {transform_indices = @transform_11, window_bounds = array<i64: 16, 32>}, {transform_indices = @transform_12, window_bounds = array<i64: 2, 1, 8, 8>}]} {
    %c0 = arith.constant 0 : index
    %c0_0 = arith.constant 0 : index
    %0 = vector.load %arg2[%c0, %c0_0] : memref<16x32xf32, #tpu.memory_space<vmem>>, vector<16x32xf32>
    %c0_1 = arith.constant 0 : index
    %c0_2 = arith.constant 0 : index
    %1 = vector.load %arg3[%c0_1, %c0_2] : memref<16x32xf32, #tpu.memory_space<vmem>>, vector<16x32xf32>
    %c0_3 = arith.constant 0 : index
    %c0_4 = arith.constant 0 : index
    %2 = vector.load %arg4[%c0_3, %c0_4] : memref<16x32xf32, #tpu.memory_space<vmem>>, vector<16x32xf32>
    %c0_5 = arith.constant 0 : index
    %c0_6 = arith.constant 0 : index
    %c0_7 = arith.constant 0 : index
    %3 = vector.load %arg5[%c0_5, %c0_6, %c0_7] : memref<1x32x8xf32, #tpu.memory_space<vmem>>, vector<1x32x8xf32>
    %4 = vector.shape_cast %3 : vector<1x32x8xf32> to vector<32x8xf32>
    %cst = arith.constant dense<0.000000e+00> : vector<16x8xf32>
    %5 = tpu.matmul %0, %4, %cst {dimension_numbers = #tpu.dot_dimension_numbers<[1], [0], [0], [1], [0, 0, 1, 1], [], []>} : vector<16x32xf32>, vector<32x8xf32>, vector<16x8xf32> -> vector<16x8xf32>
    %c0_8 = arith.constant 0 : index
    %c0_9 = arith.constant 0 : index
    %c0_10 = arith.constant 0 : index
    %6 = vector.load %arg6[%c0_8, %c0_9, %c0_10] : memref<1x1x8xf32, #tpu.memory_space<vmem>>, vector<1x1x8xf32>
    %7 = vector.shape_cast %6 : vector<1x1x8xf32> to vector<1x8xf32>
    %8 = vector.broadcast %7 : vector<1x8xf32> to vector<16x8xf32>
    %9 = arith.addf %5, %8 : vector<16x8xf32>
    %c0_11 = arith.constant 0 : index
    %c0_12 = arith.constant 0 : index
    %c0_13 = arith.constant 0 : index
    %10 = vector.load %arg7[%c0_11, %c0_12, %c0_13] : memref<1x32x8xf32, #tpu.memory_space<vmem>>, vector<1x32x8xf32>
    %11 = vector.shape_cast %10 : vector<1x32x8xf32> to vector<32x8xf32>
    %cst_14 = arith.constant dense<0.000000e+00> : vector<16x8xf32>
    %12 = tpu.matmul %1, %11, %cst_14 {dimension_numbers = #tpu.dot_dimension_numbers<[1], [0], [0], [1], [0, 0, 1, 1], [], []>} : vector<16x32xf32>, vector<32x8xf32>, vector<16x8xf32> -> vector<16x8xf32>
    %c0_15 = arith.constant 0 : index
    %c0_16 = arith.constant 0 : index
    %c0_17 = arith.constant 0 : index
    %13 = vector.load %arg8[%c0_15, %c0_16, %c0_17] : memref<1x1x8xf32, #tpu.memory_space<vmem>>, vector<1x1x8xf32>
    %14 = vector.shape_cast %13 : vector<1x1x8xf32> to vector<1x8xf32>
    %15 = vector.broadcast %14 : vector<1x8xf32> to vector<16x8xf32>
    %16 = arith.addf %12, %15 : vector<16x8xf32>
    %c0_18 = arith.constant 0 : index
    %c0_19 = arith.constant 0 : index
    %c0_20 = arith.constant 0 : index
    %17 = vector.load %arg9[%c0_18, %c0_19, %c0_20] : memref<1x32x8xf32, #tpu.memory_space<vmem>>, vector<1x32x8xf32>
    %18 = vector.shape_cast %17 : vector<1x32x8xf32> to vector<32x8xf32>
    %cst_21 = arith.constant dense<0.000000e+00> : vector<16x8xf32>
    %19 = tpu.matmul %2, %18, %cst_21 {dimension_numbers = #tpu.dot_dimension_numbers<[1], [0], [0], [1], [0, 0, 1, 1], [], []>} : vector<16x32xf32>, vector<32x8xf32>, vector<16x8xf32> -> vector<16x8xf32>
    %c0_22 = arith.constant 0 : index
    %c0_23 = arith.constant 0 : index
    %c0_24 = arith.constant 0 : index
    %20 = vector.load %arg10[%c0_22, %c0_23, %c0_24] : memref<1x1x8xf32, #tpu.memory_space<vmem>>, vector<1x1x8xf32>
    %21 = vector.shape_cast %20 : vector<1x1x8xf32> to vector<1x8xf32>
    %22 = vector.broadcast %21 : vector<1x8xf32> to vector<16x8xf32>
    %23 = arith.addf %19, %22 : vector<16x8xf32>
    %24 = arith.truncf %9 : vector<16x8xf32> to vector<16x8xbf16>
    %25 = vector.shape_cast %24 : vector<16x8xbf16> to vector<2x8x8xbf16>
    %26 = arith.truncf %16 : vector<16x8xf32> to vector<16x8xbf16>
    %27 = vector.shape_cast %26 : vector<16x8xbf16> to vector<2x8x8xbf16>
    "tpu.trace_start"() <{level = 10 : i32, message = "bqd,bkd->bqk"}> : () -> ()
    %cst_25 = arith.constant dense<0.000000e+00> : vector<2x8x8xf32>
    %28 = tpu.matmul %25, %27, %cst_25 {dimension_numbers = #tpu.dot_dimension_numbers<[2], [2], [1], [1], [0, 0, 0, 1, 1, 1], [0], [0]>} : vector<2x8x8xbf16>, vector<2x8x8xbf16>, vector<2x8x8xf32> -> vector<2x8x8xf32>
    "tpu.trace_stop"() : () -> ()
    %cst_26 = arith.constant dense<0xFF800000> : vector<2x8xf32>
    %29 = vector.multi_reduction <maximumf>, %28, %cst_26 [2] : vector<2x8x8xf32> to vector<2x8xf32>
    %30 = vector.shape_cast %29 : vector<2x8xf32> to vector<2x8x1xf32>
    %31 = vector.broadcast %30 : vector<2x8x1xf32> to vector<2x8x8xf32>
    %32 = arith.subf %28, %31 : vector<2x8x8xf32>
    %33 = math.exp %32 : vector<2x8x8xf32>
    %cst_27 = arith.constant dense<0.000000e+00> : vector<2x8xf32>
    %34 = vector.multi_reduction <add>, %33, %cst_27 [2] : vector<2x8x8xf32> to vector<2x8xf32>
    %35 = vector.shape_cast %34 : vector<2x8xf32> to vector<2x8x1xf32>
    %36 = vector.broadcast %35 : vector<2x8x1xf32> to vector<2x8x8xf32>
    %37 = arith.divf %33, %36 : vector<2x8x8xf32>
    %38 = vector.shape_cast %37 : vector<2x8x8xf32> to vector<2x1x8x8xf32>
    %c0_28 = arith.constant 0 : index
    %c0_29 = arith.constant 0 : index
    %c0_30 = arith.constant 0 : index
    %c0_31 = arith.constant 0 : index
    %39 = vector.load %arg14[%c0_28, %c0_29, %c0_30, %c0_31] : memref<2x1x8x8xf32, #tpu.memory_space<vmem>>, vector<2x1x8x8xf32>
    tpu.vector_store %arg14[%c0_28, %c0_29, %c0_30, %c0_31], %38 {strides = array<i32>} : memref<2x1x8x8xf32, #tpu.memory_space<vmem>>, vector<2x1x8x8xf32>,
    %40 = arith.truncf %37 : vector<2x8x8xf32> to vector<2x8x8xbf16>
    %41 = arith.truncf %23 : vector<16x8xf32> to vector<16x8xbf16>
    %42 = vector.shape_cast %41 : vector<16x8xbf16> to vector<2x8x8xbf16>
    "tpu.trace_start"() <{level = 10 : i32, message = "bqk,bkd->bqd"}> : () -> ()
    %cst_32 = arith.constant dense<0.000000e+00> : vector<2x8x8xf32>
    %43 = tpu.matmul %40, %42, %cst_32 {dimension_numbers = #tpu.dot_dimension_numbers<[2], [1], [1], [2], [0, 0, 0, 1, 1, 2], [0], [0]>} : vector<2x8x8xbf16>, vector<2x8x8xbf16>, vector<2x8x8xf32> -> vector<2x8x8xf32>
    %c0_i32 = arith.constant 0 : i32
    "tpu.trace_stop"() : () -> ()
    %44 = arith.cmpi eq, %arg1, %c0_i32 : i32
    %45 = arith.extui %44 : i1 to i32
    %c0_i32_33 = arith.constant 0 : i32
    %46 = arith.cmpi ne, %45, %c0_i32_33 : i32
    scf.if %46 {
      %cst_43 = arith.constant 0.000000e+00 : f32
      %57 = vector.broadcast %cst_43 : f32 to vector<16x32xf32>
      %c0_44 = arith.constant 0 : index
      %c0_45 = arith.constant 0 : index
      %58 = vector.load %arg15[%c0_44, %c0_45] : memref<16x32xf32, #tpu.memory_space<vmem>>, vector<16x32xf32>
      tpu.vector_store %arg15[%c0_44, %c0_45], %57 {strides = array<i32>} : memref<16x32xf32, #tpu.memory_space<vmem>>, vector<16x32xf32>,
    } else {
    }
    %c0_34 = arith.constant 0 : index
    %c0_35 = arith.constant 0 : index
    %47 = vector.load %arg15[%c0_34, %c0_35] : memref<16x32xf32, #tpu.memory_space<vmem>>, vector<16x32xf32>
    %48 = vector.shape_cast %43 : vector<2x8x8xf32> to vector<16x8xf32>
    %c0_36 = arith.constant 0 : index
    %c0_37 = arith.constant 0 : index
    %c0_38 = arith.constant 0 : index
    %49 = vector.load %arg11[%c0_36, %c0_37, %c0_38] : memref<1x8x32xf32, #tpu.memory_space<vmem>>, vector<1x8x32xf32>
    %50 = vector.shape_cast %49 : vector<1x8x32xf32> to vector<8x32xf32>
    %cst_39 = arith.constant dense<0.000000e+00> : vector<16x32xf32>
    %51 = tpu.matmul %48, %50, %cst_39 {dimension_numbers = #tpu.dot_dimension_numbers<[1], [0], [0], [1], [0, 0, 1, 1], [], []>} : vector<16x8xf32>, vector<8x32xf32>, vector<16x32xf32> -> vector<16x32xf32>
    %52 = arith.addf %47, %51 : vector<16x32xf32>
    %c0_40 = arith.constant 0 : index
    %c0_41 = arith.constant 0 : index
    %53 = vector.load %arg15[%c0_40, %c0_41] : memref<16x32xf32, #tpu.memory_space<vmem>>, vector<16x32xf32>
    tpu.vector_store %arg15[%c0_40, %c0_41], %52 {strides = array<i32>} : memref<16x32xf32, #tpu.memory_space<vmem>>, vector<16x32xf32>,
    %c3_i32 = arith.constant 3 : i32
    %54 = arith.cmpi eq, %arg1, %c3_i32 : i32
    %55 = arith.extui %54 : i1 to i32
    %c0_i32_42 = arith.constant 0 : i32
    %56 = arith.cmpi ne, %55, %c0_i32_42 : i32
    scf.if %56 {
      %c0_43 = arith.constant 0 : index
      %c0_44 = arith.constant 0 : index
      %57 = vector.load %arg15[%c0_43, %c0_44] : memref<16x32xf32, #tpu.memory_space<vmem>>, vector<16x32xf32>
      %c0_45 = arith.constant 0 : index
      %c0_46 = arith.constant 0 : index
      %58 = vector.load %arg12[%c0_45, %c0_46] : memref<1x32xf32, #tpu.memory_space<vmem>>, vector<1x32xf32>
      %59 = vector.broadcast %58 : vector<1x32xf32> to vector<16x32xf32>
      %60 = arith.addf %57, %59 : vector<16x32xf32>
      %c0_47 = arith.constant 0 : index
      %c0_48 = arith.constant 0 : index
      %61 = vector.load %arg13[%c0_47, %c0_48] : memref<16x32xf32, #tpu.memory_space<vmem>>, vector<16x32xf32>
      tpu.vector_store %arg13[%c0_47, %c0_48], %60 {strides = array<i32>} : memref<16x32xf32, #tpu.memory_space<vmem>>, vector<16x32xf32>,
    } else {
    }
    return
  }
  func.func @transform_0(%arg0: i32, %arg1: i32) -> (i32, i32) {
    %c0_i32 = arith.constant 0 : i32
    %c0_i32_0 = arith.constant 0 : i32
    return %arg0, %c0_i32 : i32, i32
  }
  func.func @transform_1(%arg0: i32, %arg1: i32) -> (i32, i32) {
    %c0_i32 = arith.constant 0 : i32
    %c0_i32_0 = arith.constant 0 : i32
    return %arg0, %c0_i32 : i32, i32
  }
  func.func @transform_2(%arg0: i32, %arg1: i32) -> (i32, i32) {
    %c0_i32 = arith.constant 0 : i32
    %c0_i32_0 = arith.constant 0 : i32
    return %arg0, %c0_i32 : i32, i32
  }
  func.func @transform_3(%arg0: i32, %arg1: i32) -> (i32, i32, i32) {
    %c0_i32 = arith.constant 0 : i32
    %c0_i32_0 = arith.constant 0 : i32
    %c0_i32_1 = arith.constant 0 : i32
    return %arg1, %c0_i32, %c0_i32_0 : i32, i32, i32
  }
  func.func @transform_4(%arg0: i32, %arg1: i32) -> (i32, i32, i32) {
    %c0_i32 = arith.constant 0 : i32
    %c0_i32_0 = arith.constant 0 : i32
    %c0_i32_1 = arith.constant 0 : i32
    return %arg1, %c0_i32, %c0_i32_0 : i32, i32, i32
  }
  func.func @transform_5(%arg0: i32, %arg1: i32) -> (i32, i32, i32) {
    %c0_i32 = arith.constant 0 : i32
    %c0_i32_0 = arith.constant 0 : i32
    %c0_i32_1 = arith.constant 0 : i32
    return %arg1, %c0_i32, %c0_i32_0 : i32, i32, i32
  }
  func.func @transform_6(%arg0: i32, %arg1: i32) -> (i32, i32, i32) {
    %c0_i32 = arith.constant 0 : i32
    %c0_i32_0 = arith.constant 0 : i32
    %c0_i32_1 = arith.constant 0 : i32
    return %arg1, %c0_i32, %c0_i32_0 : i32, i32, i32
  }
  func.func @transform_7(%arg0: i32, %arg1: i32) -> (i32, i32, i32) {
    %c0_i32 = arith.constant 0 : i32
    %c0_i32_0 = arith.constant 0 : i32
    %c0_i32_1 = arith.constant 0 : i32
    return %arg1, %c0_i32, %c0_i32_0 : i32, i32, i32
  }
  func.func @transform_8(%arg0: i32, %arg1: i32) -> (i32, i32, i32) {
    %c0_i32 = arith.constant 0 : i32
    %c0_i32_0 = arith.constant 0 : i32
    %c0_i32_1 = arith.constant 0 : i32
    return %arg1, %c0_i32, %c0_i32_0 : i32, i32, i32
  }
  func.func @transform_9(%arg0: i32, %arg1: i32) -> (i32, i32, i32) {
    %c0_i32 = arith.constant 0 : i32
    %c0_i32_0 = arith.constant 0 : i32
    %c0_i32_1 = arith.constant 0 : i32
    return %arg1, %c0_i32, %c0_i32_0 : i32, i32, i32
  }
  func.func @transform_10(%arg0: i32, %arg1: i32) -> (i32, i32) {
    %c0_i32 = arith.constant 0 : i32
    %c0_i32_0 = arith.constant 0 : i32
    %c0_i32_1 = arith.constant 0 : i32
    return %c0_i32, %c0_i32_0 : i32, i32
  }
  func.func @transform_11(%arg0: i32, %arg1: i32) -> (i32, i32) {
    %c0_i32 = arith.constant 0 : i32
    %c0_i32_0 = arith.constant 0 : i32
    return %arg0, %c0_i32 : i32, i32
  }
  func.func @transform_12(%arg0: i32, %arg1: i32) -> (i32, i32, i32, i32) {
    %c0_i32 = arith.constant 0 : i32
    %c0_i32_0 = arith.constant 0 : i32
    %c0_i32_1 = arith.constant 0 : i32
    return %arg0, %arg1, %c0_i32, %c0_i32_0 : i32, i32, i32, i32
  }
}

</mosaic_0001>

<bundles_post_ra>
// kernel: tpu_custom_call.1
= control target key start
LH: loop header
LB: loop body
LE: loop exit
PB: predicated region body
PF: predicated region fallthrough
CT: control target
= control target key end

     0   :  { %s2116_s0 = inlined_call_operand.vmem [shape: f32[16,32], index: 0, kind: input, shape index: {}]   ;;  %s2117_s1 = inlined_call_operand.vmem [shape: f32[16,32], index: 1, kind: input, shape index: {}]   ;;  %s2118_s2 = inlined_call_operand.vmem [shape: f32[16,32], index: 2, kind: input, shape index: {}]   ;;  %s2119_s3 = inlined_call_operand.vmem [shape: f32[4,32,8], index: 3, kind: input, shape index: {}]   ;;  %s2120_s4 = inlined_call_operand.vmem [shape: f32[4,1,8], index: 4, kind: input, shape index: {}]   ;;  %s2121_s5 = inlined_call_operand.vmem [shape: f32[4,32,8], index: 5, kind: input, shape index: {}]   ;;  %s2122_s6 = inlined_call_operand.vmem [shape: f32[4,1,8], index: 6, kind: input, shape index: {}]   ;;  %s2123_s7 = inlined_call_operand.vmem [shape: f32[4,32,8], index: 7, kind: input, shape index: {}]   ;;  %s2124_s8 = inlined_call_operand.vmem [shape: f32[4,1,8], index: 8, kind: input, shape index: {}]   ;;  %s2125_s9 = inlined_call_operand.vmem [shape: f32[4,8,32], index: 9, kind: input, shape index: {}]   ;;  %s2126_s10 = inlined_call_operand.vmem [shape: f32[1,32], index: 10, kind: input, shape index: {}]   ;;  %s2127_s11 = inlined_call_operand.hbm [shape: f32[16,32], index: 11, kind: output, shape index: {0}]   ;;  %s2128_s12 = inlined_call_operand.hbm [shape: f32[2,4,8,8], index: 12, kind: output, shape index: {1}]  }
   0x1   :  { %2137 = sst [smem:[#allocation16_spill]] %s2128_s12 }
   0x2   :  { %18 = vsyncpa [#allocation4], 0 }
   0x3   :  { %19 = vsyncpa [#allocation6], 0 }
   0x4   :  { %21 = vsyncpa [#allocation6 + $0x1], 0  ;;  %s1878_s21 = smov 0   ;;  %s1880_s22 = smov 0  }
   0x5   :  { %s1882_s23 = smov 0   ;;  %s1884_s24 = smov 0  }
   0x6   :  { %s1886_s25 = smov 0   ;;  %s1888_s26 = smov 0  }
   0x7 LB: > { %2138 = sst [smem:[#allocation9_spill]] %s1783_s21  ;;  %s1449_s27 = sadd.s32 4294967295, %s1803_s26   ;;  %s1803_s26 = sphi %s1888_s26, %s27_s26   ;;  %s1799_s25 = sphi %s1886_s25, %s2155_s25   ;;  %s1795_s24 = sphi %s1884_s24, %s2154_s24   ;;  %s1791_s23 = sphi %s1882_s23, %s2153_s23   ;;  %s1787_s22 = sphi %s1880_s22, %s2157_s22   ;;  %s1783_s21 = sphi %s1878_s21, %s2156_s21  }
   0x8   : > { %2139 = sst [smem:[#allocation10_spill]] %s1791_s23  ;;  %s1450_s28 = sadd.s32 4294967294, %s1803_s26  }
   0x9   : > { %2140 = sst [smem:[#allocation11_spill]] %s1799_s25  ;;  %s36_s29 = sadd.s32 1, %s1799_s25 }
   0xa   : > { %2141 = sst [smem:[#allocation12_spill]] %s1803_s26  ;;  %s355_s30 = sadd.s32 1, %s1791_s23 }
   0xb   : > { %p37_p0 = scmp.ge.s32.totalorder %s36_s29, 4  ;;  %p365_p1 = scmp.ne.s32.totalorder %s1791_s23, %s1787_s22 }
   0xc   : > { %p1914_p2 = scmp.eq.s32.totalorder %s1449_s27, 3  ;;  %p371_p3 = scmp.ne.s32.totalorder %s1787_s22, %s1783_s21 }
   0xd   : > { %s2159_s29 = smov (%p37_p0, %s36_s29), 0  ;;  %p372_p5 = scmp.eq.s32.totalorder %s1450_s28, 3 }
   0xe   : > { %2143 = sst [smem:[#allocation13_spill]] %s2159_s29  ;;  %p1924_p4 = por %p1914_p2, %p365_p1 }
   0xf   : > { %s351_s15 = ssub.s32 %s1799_s25, %s2159_s29  ;;  %p1456_p6 = scmp.ge.s32.totalorder %s1803_s26, 1 }
  0x10   : > { %p353_p7 = scmp.eq.s32.totalorder %s351_s15, 0  ;;  %p1931_p8 = por %p372_p5, %p371_p3 }
  0x11   : > { %p469_p9 = scmp.lt.s32.totalorder %s1803_s26, 5 }
  0x12   : > { %s2145_s16 = scalar_select %p1931_p8, 1, 0 }
  0x13   : > { %s1937_s17 = scalar_select %p353_p7, %s1791_s23, %s355_s30  }
  0x14   : > { %2146 = sst [smem:[#allocation14_spill]] %s2145_s16  ;;  %p470_p10 = pnand %p1456_p6, %p469_p9 }
  0x15   : > { %2147 = sst [smem:[#allocation15_spill]] %s1937_s17  ;;  %p567_p11 = scmp.lt.s32.totalorder (!%p470_p10), %s1795_s24, 3  ;;  %v600_v0 = vld [vmem:[%s2117_s1] sm:$0xff] (!%p470_p10)  ;;  %vm615_vm0 = vcmask (!%p470_p10), 261120   ;;  %v601_v19 = vld [vmem:[%s2117_s1 + $0x8] sm:$0xff] (!%p470_p10)  ;;  %v1805_v23 = vmov (!%p470_p10), 0.0  }
  0x16   : > { %473 = sbr.rel (%p470_p10) target bundleno = 1296 (0x510), region = 64  ;;  %v598_v1 = vld [vmem:[%s2116_s0] sm:$0xff] (!%p470_p10)  ;;  %1552 = vmatprep.mubr.msk.f32.mxu1 (!%p470_p10), %vm615_vm0, %v600_v0  ;;  %v599_v20 = vld [vmem:[%s2116_s0 + $0x8] sm:$0xff] (!%p470_p10)  ;;  %vm1806_vm1 = vmmov (!%p470_p10), 0   ;;  %vm893_vm2 = vcmask (!%p470_p10), 64512   ;;  %vm1021_vm3 = vcmask (!%p470_p10), 1043456  }
  0x17   : > { %1541 = vmatprep.mubr.msk.f32.mxu0 (!%p470_p10), %vm615_vm0, %v598_v1  ;;  %v602_v22 = vld [vmem:[%s2118_s2] sm:$0xff] (!%p470_p10)  ;;  %v603_v24 = vld [vmem:[%s2118_s2 + $0x8] sm:$0xff] (!%p470_p10)  ;;  %p1484_p12 = scmp.ne.s32.totalorder (!%p470_p10), %s1795_s24, 0 }
  0x1d   : > { %s1949_s28 = scalar_select %p567_p11, %s1795_s24, 3 }
  0x1f   : > { %s1495_s30 = sshll.u32 %s1949_s28, 5  ;;  %s1464_s15 = sshll.u32 %s1949_s28, 3 }
  0x20   : > { %s579_s18 = scalar_lea.vmem %s2121_s5, %s1495_s30  ;;  %s1959_s23 = scalar_lea.vmem %s2125_s9, %s1464_s15 }
  0x21   : > { %v697_v2 = vld [vmem:[%s579_s18] sm:$0xff]  ;;  %v698_v3 = vld [vmem:[%s579_s18 + $0x8] sm:$0xff]  ;;  %v699_v4 = vld [vmem:[%s579_s18 + $0x10] sm:$0xff]  ;;  %s571_s16 = scalar_lea.vmem %s2119_s3, %s1495_s30  ;;  %s587_s12 = scalar_lea.vmem %s2123_s7, %s1495_s30 }
  0x22   : > { %v1603_v5 = vpack.c.bf16 %v698_v3, %v697_v2  ;;  %v700_v6 = vld [vmem:[%s579_s18 + $0x18] sm:$0xff]  ;;  %v604_v7 = vld [vmem:[%s571_s16] sm:$0xff]  ;;  %v605_v8 = vld [vmem:[%s571_s16 + $0x8] sm:$0xff]  ;;  %s582_s19 = scalar_lea.vmem %s2122_s6, %s1949_s28  ;;  %s574_s21 = scalar_lea.vmem %s2120_s4, %s1949_s28 }
  0x23   : > { %v1607_v9 = vpack.c.bf16 %v700_v6, %v699_v4  ;;  %v1595_v10 = vpack.c.bf16 %v605_v8, %v604_v7  ;;  %v606_v11 = vld [vmem:[%s571_s16 + $0x10] sm:$0xff]  ;;  %v607_v12 = vld [vmem:[%s571_s16 + $0x18] sm:$0xff]  ;;  %v789_v14 = vld [vmem:[%s587_s12] sm:$0xff]  ;;  %s590_s29 = scalar_lea.vmem %s2124_s8, %s1949_s28  ;;  %s546_s28 = sand.u32 1, %s1787_s22  }
  0x24   : > { %1604 = vmatprep.subr.bf16.mxu1 %v1603_v5  ;;  %v1599_v13 = vpack.c.bf16 %v607_v12, %v606_v11  ;;  %v790_v15 = vld [vmem:[%s587_s12 + $0x8] sm:$0xff]  ;;  %v791_v17 = vld [vmem:[%s587_s12 + $0x10] sm:$0xff]  ;;  %v792_v18 = vld [vmem:[%s587_s12 + $0x18] sm:$0xff]  ;;  %s1457_s12 = sshll.u32 %s546_s28, 4 }
  0x25   : > { %1606 = vmatpush3.bf16.msra.mxu1 %v1603_v5  ;;  %1596 = vmatprep.subr.bf16.mxu0 %v1595_v10  ;;  %v1611_v16 = vpack.c.bf16 %v790_v15, %v789_v14  ;;  %v1615_v21 = vpack.c.bf16 %v792_v18, %v791_v17  ;;  %v1468_v25 = vld [vmem:[%s582_s19] ss:$0 sm:$0xff]  ;;  %s2010_s16 = scalar_lea.vmem [#allocation5], %s1457_s12 }
  0x26   : > { %1608 = vmatprep.subr.bf16.mxu1 %v1607_v9  ;;  %1598 = vmatpush3.bf16.msra.mxu0 %v1595_v10  ;;  %v1465_v31 = vld [vmem:[%s574_s21] ss:$0 sm:$0xff] }
  0x27   : > { %1600 = vmatprep.subr.bf16.mxu0 %v1599_v13  ;;  %v1471_v41 = vld [vmem:[%s590_s29] ss:$0 sm:$0xff] }
  0x29   : > { %1610 = vmatpush3.bf16.msra.mxu1 %v1607_v9 }
  0x2a   : > { %1602 = vmatpush3.bf16.msra.mxu0 %v1599_v13  ;;  %1566 = vmatprep.subr.bf16.mxu1 %v1805_v23 }
  0x2b   : > { %1612 = vmatprep.subr.bf16.mxu0 %v1611_v16 }
  0x2c   : > { %1553 = vmatmul.mubr.msk.f32.vlgmr.msra.gmra.mrb[0].mxu1 %vm615_vm0, %v601_v19 }
  0x2d   : > { %1542 = vmatmul.mubr.msk.f32.vlgmr.msra.gmra.mrb[0].mxu0 %vm615_vm0, %v599_v20  ;;  %1568 = vmatprep.mubr.msk.bf16.mxu1 %vm1806_vm1, %v1805_v23 }
  0x2e   : > { %1614 = vmatpush3.bf16.msra.mxu0 %v1611_v16  ;;  %1563 = vmatprep.mubr.msk.f32.mxu0 %vm615_vm0, %v602_v22  ;;  %v1807_v22 = vmov (!%p1484_p12), 0.0  }
  0x2f   : > { %1616 = vmatprep.subr.bf16.mxu0 %v1615_v21  ;;  %1115 = vst.msk [vmem:[#allocation2] sm:$0xff] (!%p1484_p12), %vm615_vm0, %v1807_v22  ;;  %1116 = vst.msk [vmem:[#allocation2 + $0x8] sm:$0xff] (!%p1484_p12), %vm615_vm0, %v1807_v22 }
  0x32   : > { %1618 = vmatpush3.bf16.msra.mxu0 %v1615_v21 }
  0x33   : > { %1572 = vmatprep.subr.bf16.mxu0 %v1805_v23 }
  0x35   : > { %1564 = vmatmul.mubr.msk.f32.vlgmr.msra.gmra.mrb[2].mxu0 %vm615_vm0, %v603_v24 }
  0x36   : > { %1574 = vmatprep.mubr.msk.bf16.mxu0 %vm1806_vm1, %v1805_v23 }
  0xff   : > { %v1554_v26 = vpop.f32.mrb[0].mxu1 }
 0x100   : > { %v786_v27 = vadd.f32 %v1554_v26, %v1468_v25  ;;  %v780_v28 = vpop.f32.mrb[1].mxu1  ;;  %v1543_v29 = vpop.f32.mrb[0].mxu0 }
 0x101   : > { %v781_v30 = vadd.f32 %v1468_v25, %v780_v28  ;;  %v688_v32 = vpop.f32.mrb[1].mxu0  ;;  %v694_v36 = vadd.f32 %v1543_v29, %v1465_v31 }
 0x102   : > { %v1501_v33 = vpack.c.bf16 %v786_v27, %v786_v27  ;;  %v689_v38 = vadd.f32 %v1465_v31, %v688_v32 }
 0x103   : > { %v1500_v34 = vpack.c.bf16 %v781_v30, %v781_v30  ;;  %v1499_v39 = vpack.c.bf16 %v694_v36, %v694_v36 }
 0x104   : > { %v944_v35 = vsel %vm893_vm2, %v1501_v33, 0  ;;  %v1498_v40 = vpack.c.bf16 %v689_v38, %v689_v38 }
 0x105   : > { %v898_v37 = vsel %vm893_vm2, %v1500_v34, 0  ;;  %1573 = vmatpush3.bf16.xpose.msra.mxu0 %v944_v35 }
 0x106   : > { %1567 = vmatpush3.bf16.xpose.msra.mxu1 %v898_v37  ;;  %1584 = vmatprep.subr.bf16.mxu0 %v1805_v23 }
 0x107   : > { %1578 = vmatprep.subr.bf16.mxu1 %v1805_v23 }
 0x108   : > { %v1565_v42 = vpop.f32.mrb[2].mxu0 }
 0x109   : > { %v878_v43 = vadd.f32 %v1565_v42, %v1471_v41  ;;  %v872_v44 = vpop.f32.mrb[3].mxu0 }
 0x10a   : > { %v873_v45 = vadd.f32 %v1471_v41, %v872_v44 }
 0x10b   : > { %v1503_v46 = vpack.c.bf16 %v878_v43, %v878_v43 }
 0x10c   : > { %1575 = vmatmul.mubr.msk.bf16.vlgmr.msra.gmra.mrb[4].mxu0 %vm893_vm2, %v1499_v39  ;;  %v1502_v47 = vpack.c.bf16 %v873_v45, %v873_v45 }
 0x10d   : > { %1569 = vmatmul.mubr.msk.bf16.vlgmr.msra.gmra.mrb[4].mxu1 %vm893_vm2, %v1498_v40  ;;  %1586 = vmatprep.mubr.msk.bf16.mxu0 %vm1806_vm1, %v1805_v23  ;;  %v1069_v48 = vsel %vm1021_vm3, %v1503_v46, 0 }
 0x10e   : > { %1580 = vmatprep.mubr.msk.bf16.mxu1 %vm1806_vm1, %v1805_v23  ;;  %v1023_v49 = vsel %vm1021_vm3, %v1502_v47, 0  ;;  %1585 = vmatpush3.bf16.msra.mxu0 %v1069_v48 }
 0x10f   : > { %1579 = vmatpush3.bf16.msra.mxu1 %v1023_v49 }
 0x1df   : > { %v980_v50 = vpop.f32.mrb[4].mxu0 }
 0x1e0   : > { %v934_v51 = vpop.f32.mrb[4].mxu1  ;;  %v1576_v52 = vpop.f32.mrb[5].mxu0  ;;  %v989_v59 = vsel %vm893_vm2, %v980_v50, -inf }
 0x1e1   : > { %v1570_v53 = vpop.f32.mrb[5].mxu1  ;;  %v983_v54 = vpop.f32.mrb[6].mxu0  ;;  %v986_v55 = vsel %vm893_vm2, %v934_v51, -inf }
 0x1e2   : > { %v1577_v56 = vpop.f32.mrb[7].mxu0  ;;  %987 = vmax.xlane.f32.xlu0 %v986_v55  ;;  %v937_v57 = vpop.f32.mrb[6].mxu1 }
 0x1e3   : > { %v1571_v58 = vpop.f32.mrb[7].mxu1 }
 0x1e6   : > { %990 = vmax.xlane.f32.xlu0 %v989_v59 }
 0x26f   : > { %v988_v60 = vpop.xlane.xlu0 %987 }
 0x270   : > { %v992_v61 = vsub.f32 %v934_v51, %v988_v60 }
 0x272   : > { %v994_v62 = vmul.f32 1.442695, %v992_v61 }
 0x273   : > { %v991_v63 = vpop.xlane.xlu0 %990 }
 0x274   : > { %1687 = vpow2.f32 %v994_v62  ;;  %v993_v0 = vsub.f32 %v980_v50, %v991_v63 }
 0x276   : > { %v996_v1 = vmul.f32 1.442695, %v993_v0 }
 0x278   : > { %1689 = vpow2.f32 %v996_v1 }
 0x27e   : > { %v1688_v2 = vpop.eup %1687 }
 0x27f   : > { %v998_v3 = vsel %vm893_vm2, %v1688_v2, 0.0 }
 0x280   : > { %999 = vadd.xlane.f32.xlu1 %v998_v3 }
 0x282   : > { %v1690_v4 = vpop.eup %1689 }
 0x283   : > { %v1001_v5 = vsel %vm893_vm2, %v1690_v4, 0.0 }
 0x284   : > { %1002 = vadd.xlane.f32.xlu1 %v1001_v5 }
 0x30d   : > { %v1000_v6 = vpop.xlane.xlu1 %999 }
 0x30e   : > { %1691 = vrcp.f32 %v1000_v6 }
 0x311   : > { %v1003_v7 = vpop.xlane.xlu1 %1002 }
 0x312   : > { %1693 = vrcp.f32 %v1003_v7 }
 0x318   : > { %v1692_v8 = vpop.eup %1691 }
 0x319   : > { %v1005_v9 = vmul.f32 %v1692_v8, %v1688_v2 }
 0x31b   : > { %1008 = vst.msk [vmem:[%s2010_s16] sm:$0xff] %vm893_vm2, %v1005_v9  ;;  %v1010_v10 = vpack.c.bf16 %v1005_v9, %v1005_v9 }
 0x31c   : > { %v1694_v11 = vpop.eup %1693 }
 0x31d   : > { %v1007_v12 = vmul.f32 %v1694_v11, %v1690_v4  ;;  %1581 = vmatmul.mubr.msk.bf16.vlgmr.msra.gmra.mrb[8].mxu1 %vm893_vm2, %v1010_v10 }
 0x31f   : > { %1009 = vst.msk [vmem:[%s2010_s16 + $0x8] sm:$0xff] %vm893_vm2, %v1007_v12  ;;  %v1011_v13 = vpack.c.bf16 %v1007_v12, %v1007_v12 }
 0x321   : > { %1587 = vmatmul.mubr.msk.bf16.vlgmr.msra.gmra.mrb[8].mxu0 %vm893_vm2, %v1011_v13 }
 0x3f0   : > { %v1059_v14 = vpop.f32.mrb[8].mxu1 }
 0x3f1   : > { %v1582_v15 = vpop.f32.mrb[9].mxu1  ;;  %1114 = sbr.rel (%p1484_p12) target bundleno = 1016 (0x3f8), region = 68 }
 0x3f2   : > { %v1062_v16 = vpop.f32.mrb[10].mxu1 }
 0x3f3   : > { %v1583_v17 = vpop.f32.mrb[11].mxu1 }
 0x3f4   : > { %v1105_v18 = vpop.f32.mrb[8].mxu0 }
 0x3f5   : > { %v1588_v19 = vpop.f32.mrb[9].mxu0 }
 0x3f6   : > { %v1108_v20 = vpop.f32.mrb[10].mxu0 }
 0x3f7   : > { %v1589_v21 = vpop.f32.mrb[11].mxu0 }
 0x3f8 PF: > { %v1119_v23 = vld [vmem:[%s1959_s23] sm:$0xff]  ;;  %1592 = vmatprep.mubr.msk.f32.mxu1 %vm893_vm2, %v1059_v14  ;;  %v1118_v24 = vld [vmem:[#allocation2 + $0x8] sm:$0xff]  ;;  %p1487_p13 = scmp.ne.s32.totalorder %s1795_s24, 3 }
 0x3f9   : > { %1590 = vmatprep.subr.mxu1 %v1119_v23  ;;  %v1117_v25 = vld [vmem:[#allocation2] sm:$0xff] }
 0x3fa   : > { %1591 = vmatpush3.msra.mxu1 %v1119_v23  ;;  %v1488_v31 = vld [vmem:[%s2126_s10] ss:$0 sm:$0xff] (!%p1487_p13) }
 0x3fb   : > { %1593 = vmatmul.mubr.msk.f32.vlgmr.msra.gmra.mrb[2].mxu1 %vm893_vm2, %v1105_v18 }
 0x4cc   : > { %1208 = sbr.rel (%p1487_p13) target bundleno = 1245 (0x4dd), region = 72 }
 0x4ce   : > { %v1594_v26 = vpop.f32.mrb[2].mxu1 }
 0x4cf   : > { %v1202_v27 = vadd.f32 %v1594_v26, %v1118_v24  ;;  %v1192_v28 = vpop.f32.mrb[3].mxu1 }
 0x4d0   : > { %v1201_v29 = vadd.f32 %v1192_v28, %v1117_v25 }
 0x4d1   : > { %1204 = vst.msk [vmem:[#allocation2 + $0x8] sm:$0xff] %vm615_vm0, %v1202_v27 }
 0x4d2   : > { %1203 = vst.msk [vmem:[#allocation2] sm:$0xff] %vm615_vm0, %v1201_v29 }
 0x4d8   : > { %v1210_v32 = vld [vmem:[#allocation2 + $0x8] sm:$0xff] }
 0x4d9   : > { %v1209_v30 = vld [vmem:[#allocation2] sm:$0xff]  ;;  %v1219_v34 = vadd.f32 %v1488_v31, %v1210_v32 }
 0x4da   : > { %v1218_v33 = vadd.f32 %v1488_v31, %v1209_v30 }
 0x4db   : > { %1221 = vst.msk [vmem:[#allocation3 + $0x8] sm:$0xff] %vm615_vm0, %v1219_v34 }
 0x4dc   : > { %1220 = vst.msk [vmem:[#allocation3] sm:$0xff] %vm615_vm0, %v1218_v33 }
 0x4dd PF: > { %s1808_s30 = smov [#allocation3]  }
 0x4de   : > { %s1236_s15 = sshll.u32 %s1808_s30, 4  ;;  %s1237_s15 = int_to_ptr.vmem [resolvable:$true] %s1236_s15 }
 0x4df   : > { %s1695_s18 = scalar_lea.vmem %s1237_s15, 256  ;;  %p1702_p5 = scmp.lt.s32.totalorder %s1237_s15, %s1237_s15 }
 0x4e0   : > { %p1696_p0 = scmp.ne.s32.totalorder %s1237_s15, %s1695_s18  ;;  %p1703_p6 = scmp.lt.s32.totalorder %s1695_s18, %s1695_s18 }
 0x4e2   : > { %p1697_p1 = pnand %p1696_p0, %p1914_p2  ;;  %p1704_p7 = por %p1703_p6, %p1702_p5 }
 0x4e4   : > { %p1698_p3 = pneg %p1697_p1 }
 0x4e6   : > { %p1705_p9 = pnand %p1704_p7, %p1698_p3 }
 0x4e8   : > { %1708 = shalt.err (!%p1705_p9)
}
 0x4e9   : > { %s1709_s27 = scalar_lea.hbm %s2127_s11, 256 }
 0x4ea   : > { %p1710_p10 = scmp.ne.s32.totalorder %s2127_s11, %s1709_s27  ;;  %p1715_p13 = scmp.lt.u32.totalorder %s1709_s27, %s2127_s11 }
 0x4ec   : > { %p1711_p11 = pnand %p1710_p10, %p1914_p2 }
 0x4ee   : > { %p1712_p12 = pneg %p1711_p11 }
 0x4f0   : > { %p1717_p0 = pnand %p1715_p13, %p1712_p12 }
 0x4f2   : > { %1720 = shalt.err (!%p1717_p0)
}
 0x4f3   : > { %s1809_s12 = smov 128   ;;  %s1810_s23 = smov 8  }
 0x4f4   : > { %1620 = dma.vmem_to_hbm [thread:$0]  (%p1914_p2), %s1237_s15, 256, %s2127_s11, [#allocation4], %s1809_s12, %s1809_s12, %s1810_s23  }
 0x4f5   : > { %s1491_s18 = sshll.u32 %s1795_s24, 7  ;;  %s2148_s27 = sld [smem:[#allocation16_spill]] }
 0x4f6   : > { %s1254_s25 = sshll.u32 %s2010_s16, 4  ;;  %s2064_s26 = scalar_lea.sflag [#allocation6], %s546_s28  ;;  %s2060_s25 = int_to_ptr.vmem [resolvable:$true] %s1254_s25 }
 0x4f7   : > { %s1721_s29 = scalar_lea.vmem %s2060_s25, 256  ;;  %s1811_s24 = smov [#allocation5]  }
 0x4f8   : > { %p1722_p1 = scmp.ne.s32.totalorder %s2060_s25, %s1721_s29  ;;  %s1725_s15 = sshll.u32 %s1811_s24, 4  ;;  %s1726_s15 = int_to_ptr.vmem [resolvable:$false] %s1725_s15 }
 0x4f9   : > { %s1727_s17 = scalar_lea.vmem %s1726_s15, 512  ;;  %p1728_p6 = scmp.lt.s32.totalorder %s2060_s25, %s1726_s15 }
 0x4fa   : > { %p1723_p3 = pnand %p1722_p1, %p1924_p4  ;;  %p1729_p7 = scmp.lt.s32.totalorder %s1727_s17, %s1721_s29 }
 0x4fb   : > { %s2057_s21 = scalar_lea.hbm %s2148_s27, %s1491_s18 }
 0x4fc   : > { %p1724_p5 = pneg %p1723_p3  ;;  %p1730_p9 = por %p1729_p7, %p1728_p6 }
 0x4fe   : > { %p1731_p10 = pnand %p1730_p9, %p1724_p5 }
 0x500   : > { %1734 = shalt.err (!%p1731_p10)
}
 0x501   : > { %s1735_s28 = scalar_lea.hbm %s2057_s21, 256  ;;  %s1739_s18 = scalar_lea.hbm %s2148_s27, 1024 }
 0x502   : > { %p1736_p11 = scmp.ne.s32.totalorder %s2057_s21, %s1735_s28  ;;  %p1740_p0 = scmp.lt.u32.totalorder %s2057_s21, %s2148_s27 }
 0x503   : > { %p1741_p1 = scmp.lt.u32.totalorder %s1739_s18, %s1735_s28  ;;  %p1743_p5 = scmp.lt.u32.totalorder %s1735_s28, %s2057_s21 }
 0x504   : > { %p1737_p12 = pnand %p1736_p11, %p1924_p4 }
 0x505   : > { %p1742_p3 = por %p1741_p1, %p1740_p0 }
 0x506   : > { %p1738_p13 = pneg %p1737_p12 }
 0x507   : > { %p1744_p6 = por %p1743_p5, %p1742_p3 }
 0x509   : > { %p1745_p7 = pnand %p1744_p6, %p1738_p13 }
 0x50b   : > { %1748 = shalt.err (!%p1745_p7)
}
 0x50c   : > { %s1812_s29 = smov 512  }
 0x50d   : > { %1621 = dma.vmem_to_hbm [thread:$0]  (%p1924_p4), %s2060_s25, 256, %s2057_s21, %s2064_s26, %s1809_s12, %s1812_s29, %s1810_s23  }
 0x50e   : > { %1774 = dma.done.wait (%p1914_p2), [#allocation4], 256  }
 0x50f   : > { %1776 = vsyncadd (%p1914_p2), [#allocation4], 4294967040 }
 0x510 PF: > { %s2149_s24 = sld [smem:[#allocation12_spill]]  ;;  %s2150_s15 = sld [smem:[#allocation9_spill]] }
 0x516   : > { %p1631_p9 = scmp.ge.s32.totalorder %s2149_s24, 2  ;;  %s1273_s28 = sand.u32 1, %s2150_s15  }
 0x517   : > { %s1274_s14 = scalar_lea.sflag [#allocation6], %s1273_s28 }
 0x518   : > { %p1626_p10 = pnand %p1631_p9, %p1931_p8 }
 0x51a   : > { %1778 = dma.done.wait (!%p1626_p10), %s1274_s14, 256  }
 0x51b   : > { %1780 = vsyncadd (!%p1626_p10), %s1274_s14, 4294967040  ;;  %s27_s26 = sadd.s32 1, %s2149_s24   ;;  %s2152_s12 = sld [smem:[#allocation10_spill]] }
 0x51c   : > { %p24_p11 = scmp.ge.s32.totalorder %s27_s26, 6   ;;  %s2153_s23 = sld [smem:[#allocation15_spill]] }
 0x51d   : > { %s2154_s24 = sld [smem:[#allocation11_spill]]  ;;  %s2155_s25 = sld [smem:[#allocation13_spill]] }
 0x51e   : > { %s2156_s21 = smov %s1787_s22  ;;  %26 = sbr.rel (!%p24_p11) target bundleno = 7 (0x7), region = 144 }
 0x521   : > { %s2157_s22 = smov %s2152_s12 }
 0x525   :  { %1279 = vsyncpa [#allocation4], 1 }
 0x526   :  { %1281 = vsyncpa [#allocation4 + $0x1], 1 }
 0x527   :  { %1282 = vsyncpa [#allocation6], 1 }
 0x528   :  { %1284 = vsyncpa [#allocation6 + $0x1], 1 }

</bundles_post_ra>
